<compile_context>
chip_gen: v7x
topology: tpu7x:2x2x1
jax: 0.10.0
libtpu: 0.0.40
codegen_flags: <defaults>
</compile_context>

<pallas_src>
import math

import jax
import jax.numpy as jnp
from jax.experimental import pallas as pl
from jax.experimental.pallas import tpu as pltpu


# ---------------------------------------------------------------------------
# Kernels — all arithmetic in f32; inputs arrive in their native dtype.
# ---------------------------------------------------------------------------
def _div_tensor_kernel(x_ref, y_ref, o_ref):
    x = x_ref[...].astype(jnp.float32)
    y = y_ref[...].astype(jnp.float32)      # (tile_r, W) or (tile_r, 1) -> lane broadcast
    o_ref[...] = (x / y).astype(o_ref.dtype)


def _div_scalar_kernel(x_ref, inv_ref, o_ref):
    # inv_ref: (1,)-shaped f32 SMEM ref holding the precomputed reciprocal 1/y.
    o_ref[...] = (x_ref[...].astype(jnp.float32) * inv_ref[0]).astype(o_ref.dtype)


# ---------------------------------------------------------------------------
# Tiling planner
# ---------------------------------------------------------------------------
_MAX_BLOCK_BYTES = 2 << 20        # ~2 MiB per operand per block
_MAX_LANE_W = 8192                # widest lane extent searched
_VMEM_LIMIT_BYTES = 32 << 20      # explicit scoped-VMEM budget (safe on v5e/v6e/v7x)

_COMPILER_PARAMS = pltpu.CompilerParams(
    dimension_semantics=("parallel",),
    vmem_limit_bytes=_VMEM_LIMIT_BYTES,
)


def _pick_lane_width(divides, total):
    """Largest multiple-of-128 divisor of `divides` (<= _MAX_LANE_W), preferring
    widths that leave total // W >= 8 slab rows.  None if no such divisor."""
    best = None
    w = (min(divides, _MAX_LANE_W) // 128) * 128
    while w >= 128:
        if divides % w == 0:
            if total // w >= 8:
                return w
            if best is None:
                best = w
        w -= 128
    return best


def _plan_rows(total, max_itemsize):
    """Return (W, rows, pad) for a lane-dense 2-D slab holding `total` elements."""
    W = _pick_lane_width(total, total)
    if W is not None:
        return W, total // W, 0
    if total * max_itemsize <= 2 * _MAX_BLOCK_BYTES:
        # Single full-extent block: no (8,128) alignment requirement, no padding.
        return total, 1, 0
    # Pathological: huge and not divisible by 128 — pad the flat tail.
    W = 512
    rows = -(-total // W)
    return W, rows, rows * W - total


def _row_tile(rows, W, max_itemsize, sub):
    """Sublane tile: multiple of `sub` (or full rows), <= ~2 MiB per operand,
    and >= 4 grid steps on >1 MiB tensors so "parallel" can use both v7x TCs."""
    max_tile = max(sub, (_MAX_BLOCK_BYTES // (W * max_itemsize)) // sub * sub)
    tile = rows if rows <= max_tile else max_tile
    if rows * W * max_itemsize > (1 << 20) and rows >= 4 * sub:
        while tile > sub and (rows + tile - 1) // tile < 4:
            tile = max(sub, ((tile // 2) // sub) * sub)
    return tile


# ---------------------------------------------------------------------------
# Wrapper
# ---------------------------------------------------------------------------
def eltwise_div_pallas(x, y, inplace=False):
    """Pallas-TPU equivalent of EltwiseDiv.forward: elementwise x / y."""
    x = jnp.asarray(x)
    weak_scalar_y = isinstance(y, (int, float)) and not isinstance(y, bool)
    y_arr = jnp.asarray(y)

    # torch true-division promotion: result is floating point.
    promoted = x.dtype if weak_scalar_y else jnp.promote_types(x.dtype, y_arr.dtype)
    out_dtype = promoted if jnp.issubdtype(promoted, jnp.floating) else jnp.dtype(jnp.float32)

    out_shape = jnp.broadcast_shapes(x.shape, y_arr.shape)
    total = math.prod(out_shape)
    if total == 0:
        return jnp.zeros(out_shape, out_dtype)
    if x.shape != out_shape:                       # rare: x itself broadcasts up
        x = jnp.broadcast_to(x, out_shape)

    scalar_y = (y_arr.size == 1)
    itemsizes = [jnp.dtype(x.dtype).itemsize, jnp.dtype(out_dtype).itemsize]
    if not scalar_y:
        itemsizes.append(jnp.dtype(y_arr.dtype).itemsize)
    max_it = max(itemsizes)
    sub = max(8, 32 // min(itemsizes))             # f32 -> 8, bf16 -> 16, int8 -> 32

    x_flat = x.reshape(-1)
    aliases = {}

    # ------------------------------------------------------------ scalar divisor
    if scalar_y:
        W, rows, pad = _plan_rows(total, max_it)
        if pad:
            x_flat = jnp.pad(x_flat, (0, pad))
        x2d = x_flat.reshape(rows, W)
        tile_r = _row_tile(rows, W, max_it, sub)
        blk = pl.BlockSpec((tile_r, W), lambda i: (i, 0))
        if inplace and x2d.dtype == out_dtype:
            aliases = {0: 0}
        inv = (1.0 / y_arr.astype(jnp.float32)).reshape(1)     # reciprocal once, via SMEM
        out2d = pl.pallas_call(
            _div_scalar_kernel,
            out_shape=jax.ShapeDtypeStruct((rows, W), out_dtype),
            grid=(pl.cdiv(rows, tile_r),),
            in_specs=[blk, pl.BlockSpec(memory_space=pltpu.MemorySpace.SMEM)],
            out_specs=blk,
            input_output_aliases=aliases,
            compiler_params=_COMPILER_PARAMS,
        )(x2d, inv)
        out_flat = out2d.reshape(-1)
        if pad:
            out_flat = out_flat[:total]
        return out_flat.reshape(out_shape)

    # ------------------------------------------------------------ tensor divisor
    nd = len(out_shape)
    y_al = (1,) * (nd - y_arr.ndim) + tuple(y_arr.shape)   # y right-aligned to out_shape

    if y_arr.size == total:
        # Same element count as x: stream y block-for-block alongside x.
        W, rows, pad = _plan_rows(total, max_it)
        y_flat = y_arr.reshape(-1)
        if pad:
            x_flat = jnp.pad(x_flat, (0, pad))
            y_flat = jnp.pad(y_flat, (0, pad), constant_values=1)   # keep padded region finite
        x2d = x_flat.reshape(rows, W)
        y2d = y_flat.reshape(rows, W)
        y_last = W
    else:
        # y strictly smaller than x.  Count trailing dims over which y is constant.
        t = 0
        for d in range(nd - 1, -1, -1):
            if y_al[d] == 1:
                t += 1
            else:
                break
        inner = math.prod(out_shape[nd - t:]) if t else 1
        W = _pick_lane_width(inner, total) if inner >= 128 else None
        if W is not None:
            # Fast path: per-row divisor column (rows, 1) — no broadcast materialization,
            # ~1/W of the HBM traffic a full y stream would cost.
            rows, pad = total // W, 0
            outer_shape = out_shape[: nd - t] + (1,) * t
            y_outer = jnp.broadcast_to(y_arr.reshape(y_al), outer_shape).reshape(-1)
            y2d = jnp.repeat(y_outer, inner // W).reshape(rows, 1)
            x2d = x_flat.reshape(rows, W)
            y_last = 1
        else:
            # Broadcast pattern doesn't tile cleanly (y varies along the last axis,
            # or `inner` has no multiple-of-128 divisor): fall back to a full stream.
            W, rows, pad = _plan_rows(total, max_it)
            y_flat = jnp.broadcast_to(y_arr.reshape(y_al), out_shape).reshape(-1)
            if pad:
                x_flat = jnp.pad(x_flat, (0, pad))
                y_flat = jnp.pad(y_flat, (0, pad), constant_values=1)
            x2d = x_flat.reshape(rows, W)
            y2d = y_flat.reshape(rows, W)
            y_last = W

    tile_r = _row_tile(rows, W, max_it, sub)
    x_blk = pl.BlockSpec((tile_r, W), lambda i: (i, 0))
    y_blk = pl.BlockSpec((tile_r, y_last), lambda i: (i, 0))
    if inplace and x2d.dtype == out_dtype:
        aliases = {0: 0}

    out2d = pl.pallas_call(
        _div_tensor_kernel,
        out_shape=jax.ShapeDtypeStruct((rows, W), out_dtype),
        grid=(pl.cdiv(rows, tile_r),),
        in_specs=[x_blk, y_blk],
        out_specs=x_blk,
        input_output_aliases=aliases,
        compiler_params=_COMPILER_PARAMS,
    )(x2d, y2d)

    out_flat = out2d.reshape(-1)
    if pad:
        out_flat = out_flat[:total]
    return out_flat.reshape(out_shape)


if __name__ == "__main__":
    key = jax.random.PRNGKey(0)
    kx, ky, kc = jax.random.split(key, 3)
    # Small conv-activation-like shape (NCHW): batch=2, channels=4, spatial=16x16.
    x = jax.random.normal(kx, (2, 4, 16, 16), dtype=jnp.float32)
    y = jax.random.normal(ky, (2, 4, 16, 16), dtype=jnp.float32) + 3.0   # away from 0
    y_chan = jax.random.normal(kc, (4, 1, 1), dtype=jnp.float32) + 3.0   # per-channel divisor

    # Tensor / tensor division (same shape).
    out_t = jax.block_until_ready(eltwise_div_pallas(x, y))
    ref_t = x / y
    assert out_t.shape == x.shape and out_t.dtype == x.dtype
    assert jnp.allclose(out_t, ref_t, rtol=1e-5, atol=1e-6)

    # Tensor / scalar division (SMEM reciprocal path).
    out_s = jax.block_until_ready(eltwise_div_pallas(x, 2.5))
    assert jnp.allclose(out_s, x / 2.5, rtol=1e-5, atol=1e-6)

    # Tensor / broadcastable per-channel divisor (no broadcast materialization).
    out_c = jax.block_until_ready(eltwise_div_pallas(x, y_chan))
    assert jnp.allclose(out_c, x / y_chan, rtol=1e-5, atol=1e-6)

    # inplace=True (emulated via input_output_aliases; JAX arrays are immutable).
    out_i = jax.block_until_ready(eltwise_div_pallas(x, y, inplace=True))
    assert jnp.allclose(out_i, ref_t, rtol=1e-5, atol=1e-6)

    print("KERNEL_OK")
</pallas_src>

<mosaic_0001>
module attributes {stable_mosaic.version = 11 : i64} {
  func.func @_div_tensor_kernel(%arg0: i32, %arg1: memref<8x256xf32, #tpu.memory_space<vmem>>, %arg2: memref<8x256xf32, #tpu.memory_space<vmem>>, %arg3: memref<8x256xf32, #tpu.memory_space<vmem>>) attributes {dimension_semantics = [#tpu.dimension_semantics<parallel>], iteration_bounds = array<i64: 1>, scalar_prefetch = 0 : i64, scratch_operands = 0 : i64, tpu.core_type = #tpu.core_type<tc>, window_params = [{transform_indices = @transform_0, window_bounds = array<i64: 8, 256>}, {transform_indices = @transform_1, window_bounds = array<i64: 8, 256>}, {transform_indices = @transform_2, window_bounds = array<i64: 8, 256>}]} {
    %c0 = arith.constant 0 : index
    %c0_0 = arith.constant 0 : index
    %0 = vector.load %arg1[%c0, %c0_0] : memref<8x256xf32, #tpu.memory_space<vmem>>, vector<8x256xf32>
    %c0_1 = arith.constant 0 : index
    %c0_2 = arith.constant 0 : index
    %1 = vector.load %arg2[%c0_1, %c0_2] : memref<8x256xf32, #tpu.memory_space<vmem>>, vector<8x256xf32>
    %2 = arith.divf %0, %1 : vector<8x256xf32>
    %c0_3 = arith.constant 0 : index
    %c0_4 = arith.constant 0 : index
    %3 = vector.load %arg3[%c0_3, %c0_4] : memref<8x256xf32, #tpu.memory_space<vmem>>, vector<8x256xf32>
    tpu.vector_store %arg3[%c0_3, %c0_4], %2 {strides = array<i32>} : memref<8x256xf32, #tpu.memory_space<vmem>>, vector<8x256xf32>,
    return
  }
  func.func @transform_0(%arg0: i32) -> (i32, i32) {
    %c0_i32 = arith.constant 0 : i32
    %c0_i32_0 = arith.constant 0 : i32
    return %arg0, %c0_i32 : i32, i32
  }
  func.func @transform_1(%arg0: i32) -> (i32, i32) {
    %c0_i32 = arith.constant 0 : i32
    %c0_i32_0 = arith.constant 0 : i32
    return %arg0, %c0_i32 : i32, i32
  }
  func.func @transform_2(%arg0: i32) -> (i32, i32) {
    %c0_i32 = arith.constant 0 : i32
    %c0_i32_0 = arith.constant 0 : i32
    return %arg0, %c0_i32 : i32, i32
  }
}

</mosaic_0001>

<bundles_post_ra>
// kernel: tpu_custom_call.1
= control target key start
LH: loop header
LB: loop body
LE: loop exit
PB: predicated region body
PF: predicated region fallthrough
CT: control target
= control target key end

     0   :  { %7 = vsyncpa [#allocation3], 0  ;;  %s195_s0 = inlined_call_operand.hbm [shape: f32[8,256], index: 0, kind: input, shape index: {}]   ;;  %s196_s1 = inlined_call_operand.hbm [shape: f32[8,256], index: 1, kind: input, shape index: {}]   ;;  %s197_s2 = inlined_call_operand.hbm [shape: f32[8,256], index: 2, kind: output, shape index: {}]  }
   0x1   :  { %8 = vsyncpa [#allocation6], 0 }
   0x2   :  { %9 = vsyncpa [#allocation4], 0  ;;  %s141_s9 = smov [#allocation2]   ;;  %s142_s11 = smov [#allocation5]  }
   0x3   :  { %s16_s10 = sshll.u32 %s141_s9, 4  ;;  %s26_s12 = sshll.u32 %s142_s11, 4  ;;  %s17_s10 = int_to_ptr.vmem [resolvable:$true] %s16_s10  ;;  %s27_s12 = int_to_ptr.vmem [resolvable:$true] %s26_s12 }
   0x4   :  { %s69_s15 = scalar_lea.hbm %s195_s0, 256 }
   0x5   :  { %p70_p0 = scmp.ne.s32.totalorder %s195_s0, %s69_s15  ;;  %p73_p1 = scmp.lt.u32.totalorder %s69_s15, %s195_s0 }
   0x7   :  { %p75_p2 = pnand %p73_p1, %p70_p0 }
   0x9   :  { %78 = shalt.err (!%p75_p2)
}
   0xa   :  { %s79_s20 = scalar_lea.vmem %s17_s10, 256  ;;  %p84_p4 = scmp.lt.s32.totalorder %s17_s10, %s17_s10 }
   0xb   :  { %p80_p3 = scmp.ne.s32.totalorder %s17_s10, %s79_s20  ;;  %p85_p5 = scmp.lt.s32.totalorder %s79_s20, %s79_s20 }
   0xd   :  { %p86_p6 = por %p85_p5, %p84_p4 }
   0xf   :  { %p87_p7 = pnand %p86_p6, %p80_p3 }
  0x11   :  { %90 = shalt.err (!%p87_p7)
}
  0x12   :  { %19 = dma.hbm_to_vmem [thread:$0]  %s195_s0, 256, %s17_s10, [#allocation3]  }
  0x13   :  { %s91_s25 = scalar_lea.hbm %s196_s1, 256 }
  0x14   :  { %p92_p8 = scmp.ne.s32.totalorder %s196_s1, %s91_s25  ;;  %p95_p9 = scmp.lt.u32.totalorder %s91_s25, %s196_s1 }
  0x16   :  { %p97_p10 = pnand %p95_p9, %p92_p8 }
  0x18   :  { %100 = shalt.err (!%p97_p10)
}
  0x19   :  { %s101_s30 = scalar_lea.vmem %s27_s12, 256  ;;  %p106_p12 = scmp.lt.s32.totalorder %s27_s12, %s27_s12 }
  0x1a   :  { %p102_p11 = scmp.ne.s32.totalorder %s27_s12, %s101_s30  ;;  %p107_p13 = scmp.lt.s32.totalorder %s101_s30, %s101_s30 }
  0x1c   :  { %p108_p0 = por %p107_p13, %p106_p12 }
  0x1e   :  { %p109_p1 = pnand %p108_p0, %p102_p11 }
  0x20   :  { %112 = shalt.err (!%p109_p1)
}
  0x21   :  { %29 = dma.hbm_to_vmem [thread:$0]  %s196_s1, 256, %s27_s12, [#allocation6]  }
  0x22   :  { %135 = dma.done.wait [#allocation3], 256  }
  0x23   :  { %136 = vsyncadd [#allocation3], 4294967040 }
  0x24   :  { %137 = dma.done.wait [#allocation6], 256  }
  0x25   :  { %138 = vsyncadd [#allocation6], 4294967040  ;;  %v38_v0 = vld [vmem:[#allocation5] sm:$0xff]  ;;  %v39_v1 = vld [vmem:[#allocation5 + $0x8] sm:$0xff]  ;;  %s143_s4 = smov [#allocation7]  }
  0x26   :  { %65 = vrcp.f32 %v38_v0  ;;  %v36_v2 = vld [vmem:[#allocation2] sm:$0xff]  ;;  %v37_v3 = vld [vmem:[#allocation2 + $0x8] sm:$0xff]  ;;  %s52_s5 = sshll.u32 %s143_s4, 4  ;;  %s53_s5 = int_to_ptr.vmem [resolvable:$true] %s52_s5 }
  0x27   :  { %67 = vrcp.f32 %v39_v1  ;;  %s113_s1 = scalar_lea.vmem %s53_s5, 256  ;;  %p118_p3 = scmp.lt.s32.totalorder %s53_s5, %s53_s5 }
  0x28   :  { %p114_p2 = scmp.ne.s32.totalorder %s53_s5, %s113_s1  ;;  %p119_p4 = scmp.lt.s32.totalorder %s113_s1, %s113_s1 }
  0x2a   :  { %p120_p5 = por %p119_p4, %p118_p3 }
  0x2c   :  { %p121_p6 = pnand %p120_p5, %p114_p2 }
  0x30   :  { %v66_v4 = vpop.eup %65 }
  0x31   :  { %v68_v5 = vpop.eup %67  ;;  %v41_v6 = vmul.f32 %v66_v4, %v36_v2 }
  0x32   :  { %v43_v7 = vmul.f32 %v68_v5, %v37_v3 }
  0x33   :  { %44 = vst [vmem:[#allocation7] sm:$0xff] %v41_v6 }
  0x34   :  { %45 = vst [vmem:[#allocation7 + $0x8] sm:$0xff] %v43_v7 }
  0x35   :  { %124 = shalt.err (!%p121_p6)
}
  0x36   :  { %s125_s8 = scalar_lea.hbm %s197_s2, 256 }
  0x37   :  { %p126_p7 = scmp.ne.s32.totalorder %s197_s2, %s125_s8  ;;  %p129_p8 = scmp.lt.u32.totalorder %s125_s8, %s197_s2 }
  0x39   :  { %p131_p9 = pnand %p129_p8, %p126_p7 }
  0x3b   :  { %134 = shalt.err (!%p131_p9)
}
  0x3c   :  { %55 = dma.vmem_to_hbm [thread:$0]  %s53_s5, 256, %s197_s2, [#allocation4]  }
  0x3d   :  { %139 = dma.done.wait [#allocation4], 256  }
  0x3e   :  { %140 = vsyncadd [#allocation4], 4294967040 }
  0x3f   :  { %59 = vsyncpa [#allocation3], 1 }
  0x40   :  { %60 = vsyncpa [#allocation6], 1 }
  0x41   :  { %61 = vsyncpa [#allocation4], 1 }

</bundles_post_ra>
